<compile_context>
chip_gen: v7x
topology: tpu7x:2x2x1
jax: 0.10.0
libtpu: 0.0.40
codegen_flags: <defaults>
</compile_context>

<pallas_src>
import functools

import jax
import jax.numpy as jnp
from jax.experimental import pallas as pl
from jax.experimental.pallas import tpu as pltpu


def _round_up(v, m):
    return (v + m - 1) // m * m


def _sigmoid(h):
    # tanh runs on the EUP; avoids the f32 Newton-Raphson divide of 1/(1+exp(-h)).
    return 0.5 * jnp.tanh(0.5 * h) + 0.5


def fcn_kernel(x_ref, w_ref, b_ref, o_ref, *, compute_dtype):
    x = x_ref[...]                                          # (TB, P) f32

    def linear(h, idx):
        w = w_ref[idx].astype(compute_dtype)                # (P, P)
        y = jnp.dot(h.astype(compute_dtype), w,
                    preferred_element_type=jnp.float32)     # MXU, f32 accumulate
        return y + b_ref[idx]                               # bias/activation in f32

    h = _sigmoid(linear(x, 0))                              # Linear(F->H) + Sigmoid
    h = _sigmoid(linear(h, 1))                              # Linear(H->H) + Sigmoid
    o_ref[...] = linear(h, 2).astype(o_ref.dtype)           # Linear(H->O)


def pack_params(params, *, lane=128):
    """Zero-pad each linear to (P, P)/(P,) with P = 128-aligned max dim and pack
    the three weights / three biases into single contiguous buffers (2 DMAs).
    Zero padding keeps the math exact: padded hidden lanes become sigmoid(0)=0.5
    but only ever multiply zero-padded weight rows, contributing nothing."""
    w1, b1, w2, b2, w3, b3 = params
    F, H = w1.shape
    O = w3.shape[1]
    P = max(_round_up(F, lane), _round_up(H, lane), _round_up(O, lane))

    def pad_w(w):
        return jnp.pad(w.astype(jnp.float32),
                       ((0, P - w.shape[0]), (0, P - w.shape[1])))

    def pad_b(b):
        b = b.reshape(-1).astype(jnp.float32)
        return jnp.pad(b, (0, P - b.shape[0]))

    w_pk = jnp.stack([pad_w(w1), pad_w(w2), pad_w(w3)])     # (3, P, P)
    b_pk = jnp.stack([pad_b(b1), pad_b(b2), pad_b(b3)])     # (3, P)
    return w_pk, b_pk, F, O


def fcn_predictor_forward(x, packed, *, batch_tile=128, compute_dtype=jnp.float32):
    """x: (B, n_features, input_size) or anything reshapeable to (B, F).
    `packed` is the result of pack_params (pad/pack once, reuse every call).
    compute_dtype=jnp.bfloat16 is recommended on v6e/v7x (native MXU dtype);
    activation math always stays f32."""
    w_pk, b_pk, F, O = packed
    P = w_pk.shape[-1]

    B = x.shape[0]
    x2d = x.reshape(B, -1).astype(jnp.float32)              # torch: x.reshape(B, -1)
    assert x2d.shape[1] == F, (x2d.shape, F)

    # Sublane-aligned batch tile; grid over batch tiles so large batches amortize
    # the launch and weights stay resident across the grid.
    TB = min(batch_tile, _round_up(B, 8))
    Bp = _round_up(B, TB)
    x_pad = jnp.pad(x2d, ((0, Bp - B), (0, P - F)))         # lane-dense (Bp, P)

    out = pl.pallas_call(
        functools.partial(fcn_kernel, compute_dtype=compute_dtype),
        out_shape=jax.ShapeDtypeStruct((Bp, P), jnp.float32),
        grid=(Bp // TB,),
        in_specs=[
            pl.BlockSpec((TB, P), lambda i: (i, 0)),        # x: batch-tiled
            pl.BlockSpec((3, P, P), lambda i: (0, 0, 0)),   # packed weights (resident)
            pl.BlockSpec((3, P), lambda i: (0, 0)),         # packed biases (resident)
        ],
        out_specs=pl.BlockSpec((TB, P), lambda i: (i, 0)),  # lane-dense output
        compiler_params=pltpu.CompilerParams(
            dimension_semantics=("parallel",)),
    )(x_pad, w_pk, b_pk)

    return out[:B, :O]


def init_params(key, in_features, hidden_size, output_size):
    """Mimics torch.nn.Linear init U(-1/sqrt(fan_in), 1/sqrt(fan_in)).
    Weights stored transposed: (in, out)."""
    ks = jax.random.split(key, 6)

    def linear(kw, kb, fan_in, fan_out):
        bound = 1.0 / jnp.sqrt(jnp.float32(fan_in))
        w = jax.random.uniform(kw, (fan_in, fan_out), jnp.float32, -bound, bound)
        b = jax.random.uniform(kb, (1, fan_out), jnp.float32, -bound, bound)
        return w, b

    w1, b1 = linear(ks[0], ks[1], in_features, hidden_size)
    w2, b2 = linear(ks[2], ks[3], hidden_size, hidden_size)
    w3, b3 = linear(ks[4], ks[5], hidden_size, output_size)
    return (w1, b1, w2, b2, w3, b3)


if __name__ == "__main__":
    # Module defaults: features=[0], hidden_size=64, input_size=96, output_size=96
    features = [0]
    input_size = 24 * 4
    hidden_size = 64
    output_size = 24 * 4
    batch = 2

    key = jax.random.PRNGKey(0)
    k_x, k_p = jax.random.split(key)

    # x: (B, n_features, input_size) — forward flattens to (B, n_features*input_size)
    x = jax.random.normal(k_x, (batch, len(features), input_size), jnp.float32)
    params = init_params(k_p, len(features) * input_size, hidden_size, output_size)

    packed = pack_params(params)  # pad + pack once; reuse across all forward calls

    out = fcn_predictor_forward(x, packed)
    out = jax.block_until_ready(out)

    # Pure-JAX reference (same math, same unpadded params).
    def ref(x, params):
        w1, b1, w2, b2, w3, b3 = params
        h = x.reshape(x.shape[0], -1)
        h = jax.nn.sigmoid(h @ w1 + b1)
        h = jax.nn.sigmoid(h @ w2 + b2)
        return h @ w3 + b3

    expected = ref(x, params)
    assert out.shape == (batch, output_size)
    assert jnp.allclose(out, expected, atol=1e-5, rtol=1e-5)

    print("KERNEL_OK")
</pallas_src>

<mosaic_0001>
module attributes {stable_mosaic.version = 11 : i64} {
  func.func @fcn_kernel(%arg0: i32, %arg1: memref<8x128xf32, #tpu.memory_space<vmem>>, %arg2: memref<3x128x128xf32, #tpu.memory_space<vmem>>, %arg3: memref<3x128xf32, #tpu.memory_space<vmem>>, %arg4: memref<8x128xf32, #tpu.memory_space<vmem>>) attributes {dimension_semantics = [#tpu.dimension_semantics<parallel>], iteration_bounds = array<i64: 1>, scalar_prefetch = 0 : i64, scratch_operands = 0 : i64, tpu.core_type = #tpu.core_type<tc>, window_params = [{transform_indices = @transform_0, window_bounds = array<i64: 8, 128>}, {pipeline_mode = #tpu.pipeline_mode<synchronous>, transform_indices = @transform_1, window_bounds = array<i64: 3, 128, 128>}, {pipeline_mode = #tpu.pipeline_mode<synchronous>, transform_indices = @transform_2, window_bounds = array<i64: 3, 128>}, {transform_indices = @transform_3, window_bounds = array<i64: 8, 128>}]} {
    %c0 = arith.constant 0 : index
    %c0_0 = arith.constant 0 : index
    %0 = vector.load %arg1[%c0, %c0_0] : memref<8x128xf32, #tpu.memory_space<vmem>>, vector<8x128xf32>
    %c0_1 = arith.constant 0 : index
    %c0_2 = arith.constant 0 : index
    %c0_3 = arith.constant 0 : index
    %1 = vector.load %arg2[%c0_1, %c0_2, %c0_3] : memref<3x128x128xf32, #tpu.memory_space<vmem>>, vector<1x128x128xf32>
    %2 = vector.shape_cast %1 : vector<1x128x128xf32> to vector<128x128xf32>
    %cst = arith.constant dense<0.000000e+00> : vector<8x128xf32>
    %3 = tpu.matmul %0, %2, %cst {dimension_numbers = #tpu.dot_dimension_numbers<[1], [0], [0], [1], [0, 0, 1, 1], [], []>} : vector<8x128xf32>, vector<128x128xf32>, vector<8x128xf32> -> vector<8x128xf32>
    %c0_4 = arith.constant 0 : index
    %c0_5 = arith.constant 0 : index
    %4 = vector.load %arg3[%c0_4, %c0_5] : memref<3x128xf32, #tpu.memory_space<vmem>>, vector<1x128xf32>
    %5 = vector.shape_cast %4 : vector<1x128xf32> to vector<128xf32>
    %6 = vector.shape_cast %5 : vector<128xf32> to vector<1x128xf32>
    %7 = vector.broadcast %6 : vector<1x128xf32> to vector<8x128xf32>
    %8 = arith.addf %3, %7 : vector<8x128xf32>
    %cst_6 = arith.constant 5.000000e-01 : f32
    %9 = vector.broadcast %cst_6 : f32 to vector<8x128xf32>
    %10 = arith.mulf %9, %8 : vector<8x128xf32>
    %11 = math.tanh %10 : vector<8x128xf32>
    %cst_7 = arith.constant 5.000000e-01 : f32
    %12 = vector.broadcast %cst_7 : f32 to vector<8x128xf32>
    %13 = arith.mulf %12, %11 : vector<8x128xf32>
    %cst_8 = arith.constant 5.000000e-01 : f32
    %14 = vector.broadcast %cst_8 : f32 to vector<8x128xf32>
    %15 = arith.addf %13, %14 : vector<8x128xf32>
    %c1 = arith.constant 1 : index
    %c0_9 = arith.constant 0 : index
    %c0_10 = arith.constant 0 : index
    %16 = vector.load %arg2[%c1, %c0_9, %c0_10] : memref<3x128x128xf32, #tpu.memory_space<vmem>>, vector<1x128x128xf32>
    %17 = vector.shape_cast %16 : vector<1x128x128xf32> to vector<128x128xf32>
    %cst_11 = arith.constant dense<0.000000e+00> : vector<8x128xf32>
    %18 = tpu.matmul %15, %17, %cst_11 {dimension_numbers = #tpu.dot_dimension_numbers<[1], [0], [0], [1], [0, 0, 1, 1], [], []>} : vector<8x128xf32>, vector<128x128xf32>, vector<8x128xf32> -> vector<8x128xf32>
    %c1_12 = arith.constant 1 : index
    %c0_13 = arith.constant 0 : index
    %19 = vector.load %arg3[%c1_12, %c0_13] : memref<3x128xf32, #tpu.memory_space<vmem>>, vector<1x128xf32>
    %20 = vector.shape_cast %19 : vector<1x128xf32> to vector<128xf32>
    %21 = vector.shape_cast %20 : vector<128xf32> to vector<1x128xf32>
    %22 = vector.broadcast %21 : vector<1x128xf32> to vector<8x128xf32>
    %23 = arith.addf %18, %22 : vector<8x128xf32>
    %cst_14 = arith.constant 5.000000e-01 : f32
    %24 = vector.broadcast %cst_14 : f32 to vector<8x128xf32>
    %25 = arith.mulf %24, %23 : vector<8x128xf32>
    %26 = math.tanh %25 : vector<8x128xf32>
    %cst_15 = arith.constant 5.000000e-01 : f32
    %27 = vector.broadcast %cst_15 : f32 to vector<8x128xf32>
    %28 = arith.mulf %27, %26 : vector<8x128xf32>
    %cst_16 = arith.constant 5.000000e-01 : f32
    %29 = vector.broadcast %cst_16 : f32 to vector<8x128xf32>
    %30 = arith.addf %28, %29 : vector<8x128xf32>
    %c2 = arith.constant 2 : index
    %c0_17 = arith.constant 0 : index
    %c0_18 = arith.constant 0 : index
    %31 = vector.load %arg2[%c2, %c0_17, %c0_18] : memref<3x128x128xf32, #tpu.memory_space<vmem>>, vector<1x128x128xf32>
    %32 = vector.shape_cast %31 : vector<1x128x128xf32> to vector<128x128xf32>
    %cst_19 = arith.constant dense<0.000000e+00> : vector<8x128xf32>
    %33 = tpu.matmul %30, %32, %cst_19 {dimension_numbers = #tpu.dot_dimension_numbers<[1], [0], [0], [1], [0, 0, 1, 1], [], []>} : vector<8x128xf32>, vector<128x128xf32>, vector<8x128xf32> -> vector<8x128xf32>
    %c2_20 = arith.constant 2 : index
    %c0_21 = arith.constant 0 : index
    %34 = vector.load %arg3[%c2_20, %c0_21] : memref<3x128xf32, #tpu.memory_space<vmem>>, vector<1x128xf32>
    %35 = vector.shape_cast %34 : vector<1x128xf32> to vector<128xf32>
    %36 = vector.shape_cast %35 : vector<128xf32> to vector<1x128xf32>
    %37 = vector.broadcast %36 : vector<1x128xf32> to vector<8x128xf32>
    %38 = arith.addf %33, %37 : vector<8x128xf32>
    %c0_22 = arith.constant 0 : index
    %c0_23 = arith.constant 0 : index
    %39 = vector.load %arg4[%c0_22, %c0_23] : memref<8x128xf32, #tpu.memory_space<vmem>>, vector<8x128xf32>
    tpu.vector_store %arg4[%c0_22, %c0_23], %38 {strides = array<i32>} : memref<8x128xf32, #tpu.memory_space<vmem>>, vector<8x128xf32>,
    return
  }
  func.func @transform_0(%arg0: i32) -> (i32, i32) {
    %c0_i32 = arith.constant 0 : i32
    %c0_i32_0 = arith.constant 0 : i32
    return %arg0, %c0_i32 : i32, i32
  }
  func.func @transform_1(%arg0: i32) -> (i32, i32, i32) {
    %c0_i32 = arith.constant 0 : i32
    %c0_i32_0 = arith.constant 0 : i32
    %c0_i32_1 = arith.constant 0 : i32
    %c0_i32_2 = arith.constant 0 : i32
    return %c0_i32, %c0_i32_0, %c0_i32_1 : i32, i32, i32
  }
  func.func @transform_2(%arg0: i32) -> (i32, i32) {
    %c0_i32 = arith.constant 0 : i32
    %c0_i32_0 = arith.constant 0 : i32
    %c0_i32_1 = arith.constant 0 : i32
    return %c0_i32, %c0_i32_0 : i32, i32
  }
  func.func @transform_3(%arg0: i32) -> (i32, i32) {
    %c0_i32 = arith.constant 0 : i32
    %c0_i32_0 = arith.constant 0 : i32
    return %arg0, %c0_i32 : i32, i32
  }
}

</mosaic_0001>

<bundles_post_ra>
// kernel: tpu_custom_call.1
= control target key start
LH: loop header
LB: loop body
LE: loop exit
PB: predicated region body
PF: predicated region fallthrough
CT: control target
= control target key end

     0   :  { %8 = vsyncpa [#allocation3], 0  ;;  %s764_s0 = inlined_call_operand.hbm [shape: f32[8,128], index: 0, kind: input, shape index: {}]   ;;  %s765_s1 = inlined_call_operand.hbm [shape: f32[3,128,128], index: 1, kind: input, shape index: {}]   ;;  %s766_s2 = inlined_call_operand.vmem [shape: f32[3,128], index: 2, kind: input, shape index: {}]   ;;  %s767_s3 = inlined_call_operand.hbm [shape: f32[8,128], index: 3, kind: output, shape index: {}]  }
   0x1   :  { %9 = vsyncpa [#allocation6], 0 }
   0x2   :  { %10 = vsyncpa [#allocation4], 0  ;;  %s657_s12 = smov [#allocation2]   ;;  %s658_s14 = smov [#allocation5]  }
   0x3   :  { %s17_s13 = sshll.u32 %s657_s12, 4  ;;  %s26_s15 = sshll.u32 %s658_s14, 4  ;;  %s18_s13 = int_to_ptr.vmem [resolvable:$true] %s17_s13  ;;  %s685_s15 = int_to_ptr.vmem [resolvable:$true] %s26_s15 }
   0x4   :  { %s585_s18 = scalar_lea.hbm %s764_s0, 128 }
   0x5   :  { %p586_p0 = scmp.ne.s32.totalorder %s764_s0, %s585_s18  ;;  %p589_p1 = scmp.lt.u32.totalorder %s585_s18, %s764_s0 }
   0x7   :  { %p591_p2 = pnand %p589_p1, %p586_p0 }
   0x9   :  { %594 = shalt.err (!%p591_p2)
}
   0xa   :  { %s595_s23 = scalar_lea.vmem %s18_s13, 128  ;;  %p600_p4 = scmp.lt.s32.totalorder %s18_s13, %s18_s13 }
   0xb   :  { %p596_p3 = scmp.ne.s32.totalorder %s18_s13, %s595_s23  ;;  %p601_p5 = scmp.lt.s32.totalorder %s595_s23, %s595_s23 }
   0xd   :  { %p602_p6 = por %p601_p5, %p600_p4 }
   0xf   :  { %p603_p7 = pnand %p602_p6, %p596_p3 }
  0x11   :  { %606 = shalt.err (!%p603_p7)
}
  0x12   :  { %20 = dma.hbm_to_vmem [thread:$0]  %s764_s0, 128, %s18_s13, [#allocation3]  }
  0x13   :  { %s607_s28 = scalar_lea.hbm %s765_s1, 6144 }
  0x14   :  { %p608_p8 = scmp.ne.s32.totalorder %s765_s1, %s607_s28  ;;  %p611_p9 = scmp.lt.u32.totalorder %s607_s28, %s765_s1 }
  0x16   :  { %p613_p10 = pnand %p611_p9, %p608_p8 }
  0x18   :  { %616 = shalt.err (!%p613_p10)
}
  0x19   :  { %s617_s6 = scalar_lea.vmem %s685_s15, 6144  ;;  %p622_p12 = scmp.lt.s32.totalorder %s685_s15, %s685_s15 }
  0x1a   :  { %p618_p11 = scmp.ne.s32.totalorder %s685_s15, %s617_s6  ;;  %p623_p13 = scmp.lt.s32.totalorder %s617_s6, %s617_s6 }
  0x1c   :  { %p624_p0 = por %p623_p13, %p622_p12 }
  0x1e   :  { %p625_p1 = pnand %p624_p0, %p618_p11 }
  0x20   :  { %628 = shalt.err (!%p625_p1)
}
  0x21   :  { %s659_s0 = smov 128   ;;  %s660_s7 = smov 8  }
  0x22   :  { %32 = dma.hbm_to_vmem [thread:$0]  %s765_s1, 6144, %s685_s15, [#allocation6], %s659_s0, %s659_s0, %s660_s7  }
  0x23   :  { %651 = dma.done.wait [#allocation3], 128  }
  0x24   :  { %652 = vsyncadd [#allocation3], 4294967168 }
  0x25   :  { %653 = dma.done.wait [#allocation6], 6144  }
  0x26   :  { %654 = vsyncadd [#allocation6], 4294961152  ;;  %v661_v0 = vmov 0.0|0.0   ;;  %vm662_vm0 = vmmov 0   ;;  %v663_v1 = vmov 0.0   ;;  %v42_v2 = vld [vmem:[#allocation5] sm:$0xff] }
  0x27   :  { %501 = vmatprep.subr.bf16.mxu0 %v661_v0  ;;  %428 = vmatprep.mubr.msk.f32.mxu0 %vm662_vm0, %v663_v1  ;;  %v43_v3 = vld [vmem:[#allocation5 + $0x8] sm:$0xff]  ;;  %v44_v4 = vld [vmem:[#allocation5 + $0x10] sm:$0xff]  ;;  %v45_v6 = vld [vmem:[#allocation5 + $0x18] sm:$0xff]  ;;  %s664_s15 = smov [#allocation7]  }
  0x28   :  { %525 = vmatprep.subr.bf16.mxu1 %v661_v0  ;;  %463 = vmatprep.mubr.msk.f32.mxu1 %vm662_vm0, %v663_v1  ;;  %v502_v5 = vpack.c.bf16 %v43_v3, %v42_v2  ;;  %v505_v7 = vpack.c.bf16 %v45_v6, %v44_v4  ;;  %v46_v8 = vld [vmem:[#allocation5 + $0x20] sm:$0xff]  ;;  %v47_v9 = vld [vmem:[#allocation5 + $0x28] sm:$0xff]  ;;  %v140_v12 = vld [vmem:[#allocation5 + $0x90] sm:$0xff]  ;;  %s332_s16 = sshll.u32 %s664_s15, 4  ;;  %s333_s16 = int_to_ptr.vmem [resolvable:$true] %s332_s16 }
  0x29   :  { %v138_v10 = vld [vmem:[#allocation5 + $0x80] sm:$0xff]  ;;  %v139_v11 = vld [vmem:[#allocation5 + $0x88] sm:$0xff]  ;;  %v141_v13 = vld [vmem:[#allocation5 + $0x98] sm:$0xff]  ;;  %v508_v14 = vpack.c.bf16 %v47_v9, %v46_v8  ;;  %s629_s17 = scalar_lea.vmem %s333_s16, 128  ;;  %p634_p3 = scmp.lt.s32.totalorder %s333_s16, %s333_s16 }
  0x2a   :  { %503 = vmatpush3.bf16.msra.mxu0 %v502_v5  ;;  %v526_v15 = vpack.c.bf16 %v139_v11, %v138_v10  ;;  %v48_v16 = vld [vmem:[#allocation5 + $0x30] sm:$0xff]  ;;  %v49_v17 = vld [vmem:[#allocation5 + $0x38] sm:$0xff]  ;;  %v529_v18 = vpack.c.bf16 %v141_v13, %v140_v12  ;;  %v142_v19 = vld [vmem:[#allocation5 + $0xa0] sm:$0xff]  ;;  %p630_p2 = scmp.ne.s32.totalorder %s333_s16, %s629_s17  ;;  %p635_p4 = scmp.lt.s32.totalorder %s629_s17, %s629_s17 }
  0x2b   :  { %504 = vmatprep.subr.bf16.mxu0 %v661_v0  ;;  %v143_v20 = vld [vmem:[#allocation5 + $0xa8] sm:$0xff]  ;;  %v511_v21 = vpack.c.bf16 %v49_v17, %v48_v16  ;;  %v50_v22 = vld [vmem:[#allocation5 + $0x40] sm:$0xff]  ;;  %v52_v26 = vld [vmem:[#allocation5 + $0x50] sm:$0xff] }
  0x2c   :  { %527 = vmatpush3.bf16.msra.mxu1 %v526_v15  ;;  %v51_v23 = vld [vmem:[#allocation5 + $0x48] sm:$0xff]  ;;  %v532_v24 = vpack.c.bf16 %v143_v20, %v142_v19  ;;  %v53_v27 = vld [vmem:[#allocation5 + $0x58] sm:$0xff]  ;;  %v54_v29 = vld [vmem:[#allocation5 + $0x60] sm:$0xff]  ;;  %p636_p5 = por %p635_p4, %p634_p3 }
  0x2d   :  { %528 = vmatprep.subr.bf16.mxu1 %v661_v0  ;;  %v514_v25 = vpack.c.bf16 %v51_v23, %v50_v22  ;;  %v517_v28 = vpack.c.bf16 %v53_v27, %v52_v26  ;;  %v55_v30 = vld [vmem:[#allocation5 + $0x68] sm:$0xff]  ;;  %v56_v32 = vld [vmem:[#allocation5 + $0x70] sm:$0xff]  ;;  %v57_v33 = vld [vmem:[#allocation5 + $0x78] sm:$0xff] }
  0x2e   :  { %506 = vmatpush3.bf16.msra.mxu0 %v505_v7  ;;  %v520_v31 = vpack.c.bf16 %v55_v30, %v54_v29  ;;  %v523_v34 = vpack.c.bf16 %v57_v33, %v56_v32  ;;  %v41_v35 = vld [vmem:[#allocation2] sm:$0xff]  ;;  %v144_v36 = vld [vmem:[#allocation5 + $0xb0] sm:$0xff]  ;;  %v146_v39 = vld [vmem:[#allocation5 + $0xc0] sm:$0xff]  ;;  %p637_p6 = pnand %p636_p5, %p630_p2 }
  0x2f   :  { %507 = vmatprep.subr.bf16.mxu0 %v661_v0  ;;  %v145_v37 = vld [vmem:[#allocation5 + $0xb8] sm:$0xff]  ;;  %v147_v40 = vld [vmem:[#allocation5 + $0xc8] sm:$0xff]  ;;  %v148_v42 = vld [vmem:[#allocation5 + $0xd0] sm:$0xff] }
  0x30   :  { %530 = vmatpush3.bf16.msra.mxu1 %v529_v18  ;;  %v535_v38 = vpack.c.bf16 %v145_v37, %v144_v36  ;;  %v538_v41 = vpack.c.bf16 %v147_v40, %v146_v39  ;;  %v149_v43 = vld [vmem:[#allocation5 + $0xd8] sm:$0xff]  ;;  %v150_v45 = vld [vmem:[#allocation5 + $0xe0] sm:$0xff]  ;;  %v151_v46 = vld [vmem:[#allocation5 + $0xe8] sm:$0xff] }
  0x31   :  { %531 = vmatprep.subr.bf16.mxu1 %v661_v0  ;;  %v541_v44 = vpack.c.bf16 %v149_v43, %v148_v42  ;;  %v544_v47 = vpack.c.bf16 %v151_v46, %v150_v45  ;;  %v152_v48 = vld [vmem:[#allocation5 + $0xf0] sm:$0xff]  ;;  %v153_v49 = vld [vmem:[#allocation5 + $0xf8] sm:$0xff]  ;;  %v234_v51 = vld [vmem:[#allocation5 + $0x100] sm:$0xff] }
  0x32   :  { %509 = vmatpush3.bf16.msra.mxu0 %v508_v14  ;;  %v547_v50 = vpack.c.bf16 %v153_v49, %v152_v48  ;;  %v235_v52 = vld [vmem:[#allocation5 + $0x108] sm:$0xff]  ;;  %v236_v53 = vld [vmem:[#allocation5 + $0x110] sm:$0xff]  ;;  %v237_v55 = vld [vmem:[#allocation5 + $0x118] sm:$0xff] }
  0x33   :  { %510 = vmatprep.subr.bf16.mxu0 %v661_v0  ;;  %v550_v54 = vpack.c.bf16 %v235_v52, %v234_v51  ;;  %v553_v56 = vpack.c.bf16 %v237_v55, %v236_v53  ;;  %v238_v57 = vld [vmem:[#allocation5 + $0x120] sm:$0xff]  ;;  %v239_v58 = vld [vmem:[#allocation5 + $0x128] sm:$0xff]  ;;  %v342_v60 = vld [vmem:[%s766_s2] ss:$0 sm:$0xff] }
  0x34   :  { %533 = vmatpush3.bf16.msra.mxu1 %v532_v24  ;;  %v556_v59 = vpack.c.bf16 %v239_v58, %v238_v57  ;;  %v240_v5 = vld [vmem:[#allocation5 + $0x130] sm:$0xff]  ;;  %v241_v6 = vld [vmem:[#allocation5 + $0x138] sm:$0xff]  ;;  %v242_v8 = vld [vmem:[#allocation5 + $0x140] sm:$0xff] }
  0x35   :  { %534 = vmatprep.subr.bf16.mxu1 %v661_v0  ;;  %v559_v7 = vpack.c.bf16 %v241_v6, %v240_v5  ;;  %v243_v9 = vld [vmem:[#allocation5 + $0x148] sm:$0xff]  ;;  %v244_v11 = vld [vmem:[#allocation5 + $0x150] sm:$0xff]  ;;  %v245_v12 = vld [vmem:[#allocation5 + $0x158] sm:$0xff] }
  0x36   :  { %512 = vmatpush3.bf16.msra.mxu0 %v511_v21  ;;  %v562_v10 = vpack.c.bf16 %v243_v9, %v242_v8  ;;  %v565_v13 = vpack.c.bf16 %v245_v12, %v244_v11  ;;  %v246_v14 = vld [vmem:[#allocation5 + $0x160] sm:$0xff]  ;;  %v247_v15 = vld [vmem:[#allocation5 + $0x168] sm:$0xff]  ;;  %v248_v17 = vld [vmem:[#allocation5 + $0x170] sm:$0xff] }
  0x37   :  { %513 = vmatprep.subr.bf16.mxu0 %v661_v0  ;;  %v568_v16 = vpack.c.bf16 %v247_v15, %v246_v14  ;;  %v249_v18 = vld [vmem:[#allocation5 + $0x178] sm:$0xff] }
  0x38   :  { %536 = vmatpush3.bf16.msra.mxu1 %v535_v38  ;;  %v571_v19 = vpack.c.bf16 %v249_v18, %v248_v17  ;;  %v343_v20 = vld [vmem:[%s766_s2 + $0x1] ss:$0 sm:$0xff] }
  0x39   :  { %537 = vmatprep.subr.bf16.mxu1 %v661_v0 }
  0x3a   :  { %515 = vmatpush3.bf16.msra.mxu0 %v514_v25 }
  0x3b   :  { %516 = vmatprep.subr.bf16.mxu0 %v661_v0 }
  0x3c   :  { %539 = vmatpush3.bf16.msra.mxu1 %v538_v41 }
  0x3d   :  { %540 = vmatprep.subr.bf16.mxu1 %v661_v0 }
  0x3e   :  { %518 = vmatpush3.bf16.msra.mxu0 %v517_v28 }
  0x3f   :  { %519 = vmatprep.subr.bf16.mxu0 %v661_v0 }
  0x40   :  { %542 = vmatpush3.bf16.msra.mxu1 %v541_v44 }
  0x41   :  { %543 = vmatprep.subr.bf16.mxu1 %v661_v0 }
  0x42   :  { %521 = vmatpush3.bf16.msra.mxu0 %v520_v31 }
  0x43   :  { %522 = vmatprep.subr.bf16.mxu0 %v661_v0 }
  0x44   :  { %545 = vmatpush3.bf16.msra.mxu1 %v544_v47 }
  0x45   :  { %546 = vmatprep.subr.bf16.mxu1 %v661_v0 }
  0x46   :  { %524 = vmatpush3.bf16.msra.mxu0 %v523_v34 }
  0x47   :  { %549 = vmatprep.subr.bf16.mxu0 %v661_v0 }
  0x48   :  { %548 = vmatpush3.bf16.msra.mxu1 %v547_v50 }
  0x49   :  { %429 = vmatmul.mubr.f32.vlgmr.msra.gmra.mrb[0].mxu0 %v41_v35 }
  0x4a   :  { %498 = vmatprep.mubr.msk.f32.mxu0 %vm662_vm0, %v663_v1  ;;  %551 = vmatpush3.bf16.msra.mxu0 %v550_v54 }
  0x4b   :  { %552 = vmatprep.subr.bf16.mxu0 %v661_v0 }
  0x4e   :  { %554 = vmatpush3.bf16.msra.mxu0 %v553_v56 }
  0x4f   :  { %555 = vmatprep.subr.bf16.mxu0 %v661_v0 }
  0x52   :  { %557 = vmatpush3.bf16.msra.mxu0 %v556_v59 }
  0x53   :  { %558 = vmatprep.subr.bf16.mxu0 %v661_v0 }
  0x56   :  { %560 = vmatpush3.bf16.msra.mxu0 %v559_v7 }
  0x57   :  { %561 = vmatprep.subr.bf16.mxu0 %v661_v0 }
  0x5a   :  { %563 = vmatpush3.bf16.msra.mxu0 %v562_v10 }
  0x5b   :  { %564 = vmatprep.subr.bf16.mxu0 %v661_v0 }
  0x5e   :  { %566 = vmatpush3.bf16.msra.mxu0 %v565_v13 }
  0x5f   :  { %567 = vmatprep.subr.bf16.mxu0 %v661_v0 }
  0x62   :  { %569 = vmatpush3.bf16.msra.mxu0 %v568_v16 }
  0x63   :  { %570 = vmatprep.subr.bf16.mxu0 %v661_v0  ;;  %v344_v0 = vld [vmem:[%s766_s2 + $0x2] ss:$0 sm:$0xff] }
  0x66   :  { %572 = vmatpush3.bf16.msra.mxu0 %v571_v19 }
 0x11c   :  { %v129_v61 = vpop.f32.mrb[0].mxu0 }
 0x11d   :  { %v130_v62 = vadd.f32 %v342_v60, %v129_v61  ;;  %v430_v63 = vpop.f32.mrb[1].mxu0 }
 0x11f   :  { %v133_v1 = vmul.f32 0.5, %v130_v62 }
 0x121   :  { %581 = vtanh.f32 %v133_v1 }
 0x12b   :  { %v582_v2 = vpop.eup %581 }
 0x12c   :  { %v135_v3 = vmul.f32 0.5, %v582_v2 }
 0x12e   :  { %v136_v4 = vadd.f32 0.5, %v135_v3 }
 0x130   :  { %464 = vmatmul.mubr.f32.vlgmr.msra.gmra.mrb[0].mxu1 %v136_v4 }
 0x203   :  { %v225_v21 = vpop.f32.mrb[0].mxu1 }
 0x204   :  { %v226_v22 = vadd.f32 %v343_v20, %v225_v21  ;;  %v465_v23 = vpop.f32.mrb[1].mxu1 }
 0x206   :  { %v229_v24 = vmul.f32 0.5, %v226_v22 }
 0x208   :  { %583 = vtanh.f32 %v229_v24 }
 0x212   :  { %v584_v25 = vpop.eup %583 }
 0x213   :  { %v231_v26 = vmul.f32 0.5, %v584_v25 }
 0x215   :  { %v232_v27 = vadd.f32 0.5, %v231_v26 }
 0x217   :  { %499 = vmatmul.mubr.f32.vlgmr.msra.gmra.mrb[2].mxu0 %v232_v27 }
 0x2ea   :  { %v321_v28 = vpop.f32.mrb[2].mxu0 }
 0x2eb   :  { %v322_v29 = vadd.f32 %v344_v0, %v321_v28  ;;  %v500_v30 = vpop.f32.mrb[3].mxu0 }
 0x2ed   :  { %325 = vst [vmem:[#allocation7] sm:$0xff] %v322_v29 }
 0x2ee   :  { %640 = shalt.err (!%p637_p6)
}
 0x2ef   :  { %s641_s20 = scalar_lea.hbm %s767_s3, 128 }
 0x2f0   :  { %p642_p7 = scmp.ne.s32.totalorder %s767_s3, %s641_s20  ;;  %p645_p8 = scmp.lt.u32.totalorder %s641_s20, %s767_s3 }
 0x2f2   :  { %p647_p9 = pnand %p645_p8, %p642_p7 }
 0x2f4   :  { %650 = shalt.err (!%p647_p9)
}
 0x2f5   :  { %335 = dma.vmem_to_hbm [thread:$0]  %s333_s16, 128, %s767_s3, [#allocation4]  }
 0x2f6   :  { %655 = dma.done.wait [#allocation4], 128  }
 0x2f7   :  { %656 = vsyncadd [#allocation4], 4294967168 }
 0x2f8   :  { %339 = vsyncpa [#allocation3], 1 }
 0x2f9   :  { %340 = vsyncpa [#allocation6], 1 }
 0x2fa   :  { %341 = vsyncpa [#allocation4], 1 }

</bundles_post_ra>
